<compile_context>
chip_gen: v5e
topology: v5e:2x2
jax: 0.10.0
libtpu: 0.0.40
codegen_flags: <defaults>
</compile_context>

<pallas_src>
import functools

import jax
import jax.numpy as jnp
from jax import lax
from jax.experimental import pallas as pl
from jax.experimental.pallas import tpu as pltpu


def _bert_embeddings_kernel(
    wid_ref,      # SMEM (Np,) int32     flattened word ids (scalar prefetch)
    oid_ref,      # VMEM (TS, 3) int32   [pos, token_type, pos_tag] ids, pre-offset
    word_hbm,     # ANY  (V, H) f32      word embedding table, stays in HBM
    small_ref,    # VMEM (C, H) bf16     concat(pos_tbl, tt_tbl, pt_tbl), rows padded
    gamma_ref,    # VMEM (1, H) f32      LayerNorm weight
    beta_ref,     # VMEM (1, H) f32      LayerNorm bias
    out_ref,      # VMEM (TS, H) f32     output tile
    wbuf,         # VMEM (TS, H) f32     DMA landing buffer for gathered word rows
    sem,          # DMA semaphore ring (NBUF,), NBUF power of two
    *,
    eps,
):
    ts = out_ref.shape[0]
    nbuf = sem.shape[0]                      # power of two -> & instead of %
    t0 = pl.program_id(0) * ts               # first flattened token of this tile

    # ---- 1) issue ALL word-row gathers up front (DMA engine hides HBM latency) ----
    @pl.loop(0, ts)
    def _(s):
        wid = wid_ref[t0 + s]
        pltpu.make_async_copy(
            word_hbm.at[pl.ds(wid, 1), :],
            wbuf.at[pl.ds(s, 1), :],
            sem.at[s & (nbuf - 1)],
        ).start()

    # ---- 2) overlap: all small-table lookups as ONE multi-hot MXU matmul ----------
    ids = oid_ref[...]                                        # (TS, 3) int32
    c = small_ref.shape[0]
    classes = lax.broadcasted_iota(jnp.int32, (ts, c), 1)     # (TS, C)
    # The three id ranges are disjoint (pre-offset in the wrapper), so OR == sum.
    hit = (
        (ids[:, 0:1] == classes)
        | (ids[:, 1:2] == classes)
        | (ids[:, 2:3] == classes)
    )
    multi_hot = hit.astype(jnp.float32).astype(jnp.bfloat16)  # bf16 MXU operand
    small = jnp.dot(multi_hot, small_ref[...],
                    preferred_element_type=jnp.float32)       # (TS, H) f32

    # ---- 3) wait for all gathers (descriptor is size-only; all row copies equal) ---
    @pl.loop(0, ts)
    def _(s):
        pltpu.make_async_copy(
            word_hbm.at[pl.ds(0, 1), :],     # same (1, H) size as every started copy
            wbuf.at[pl.ds(s, 1), :],
            sem.at[s & (nbuf - 1)],
        ).wait()

    # ---- 4) sum + one-pass LayerNorm in vregs; single lane-dense store -------------
    x = wbuf[...] + small                                     # (TS, H) f32
    h_inv = 1.0 / x.shape[-1]
    mean = jnp.sum(x, axis=-1, keepdims=True) * h_inv
    meansq = jnp.sum(x * x, axis=-1, keepdims=True) * h_inv
    var = meansq - mean * mean
    y = (x - mean) * lax.rsqrt(var + eps) * gamma_ref[...] + beta_ref[...]
    out_ref[...] = y.astype(out_ref.dtype)
    # TODO(synk): training-mode dropout not implemented (eval: identity).


def _round_up(x, m):
    return (x + m - 1) // m * m


def _pad_rows_to(tbl, mult=8):
    pad = (-tbl.shape[0]) % mult
    if pad:
        tbl = jnp.pad(tbl, ((0, pad), (0, 0)))
    return tbl


def bert_embeddings(
    input_ids,          # (B, S) int32
    word_emb,           # (V, H) f32
    pos_emb,            # (P, H) f32
    tt_emb,             # (T, H) f32
    pt_emb,             # (G, H) f32
    ln_gamma,           # (H,) f32
    ln_beta,            # (H,) f32
    *,
    token_type_ids=None,
    position_ids=None,
    pos_tag_id=None,
    past_key_values_length=0,
    layer_norm_eps=1e-12,
    token_tile=512,           # large tile amortizes ~0.35 us/grid-step overhead
    dma_sem_ring=16,          # wait-bookkeeping ring size (rounded to power of two)
):
    B, S = input_ids.shape
    V, H = word_emb.shape
    P = pos_emb.shape[0]
    T = tt_emb.shape[0]

    # ---- default ids (mirrors the PyTorch module) ---------------------------
    if position_ids is None:
        position_ids = jnp.arange(
            past_key_values_length, past_key_values_length + S, dtype=jnp.int32
        )[None, :]
    position_ids = jnp.broadcast_to(position_ids, (B, S)).astype(jnp.int32)
    if token_type_ids is None:
        token_type_ids = jnp.zeros((B, S), jnp.int32)
    if pos_tag_id is None:
        # Module skips the pos-tag term when pos_tag_id is None: use a zero row.
        pos_tag_id = jnp.zeros((B, S), jnp.int32)
        pt_tbl = jnp.zeros((1, H), jnp.float32)
    else:
        pt_tbl = pt_emb.astype(jnp.float32)
    G = pt_tbl.shape[0]

    # ---- padded cdiv grid over flattened tokens (never one giant tile) ------
    N = B * S
    ts = max(8, min(_round_up(token_tile, 8), _round_up(N, 8)))
    Np = _round_up(N, ts)
    n_tiles = Np // ts
    pad = Np - N

    nbuf = 1
    while nbuf * 2 <= max(1, dma_sem_ring):
        nbuf *= 2

    # Clamp ids: OOB ids would otherwise read arbitrary HBM with no check.
    word_ids = jnp.clip(input_ids.reshape(N).astype(jnp.int32), 0, V - 1)
    pos_ids = jnp.clip(position_ids.reshape(N), 0, P - 1)
    tt_ids = jnp.clip(token_type_ids.reshape(N).astype(jnp.int32), 0, T - 1)
    pt_ids = jnp.clip(pos_tag_id.reshape(N).astype(jnp.int32), 0, G - 1)

    # Pre-offset ids into the concatenated small table; pad the token tail with
    # valid ids (row 0 / pad token) -- padded output rows are discarded below.
    other_ids = jnp.stack([pos_ids, tt_ids + P, pt_ids + P + T], axis=1)   # (N, 3)
    if pad:
        word_ids = jnp.pad(word_ids, (0, pad))
        other_ids = jnp.pad(other_ids, ((0, pad), (0, 0)))

    # Concatenated small table as bf16 MXU operand (f32 accumulation in-kernel).
    small_tbl = jnp.concatenate(
        [pos_emb.astype(jnp.float32), tt_emb.astype(jnp.float32), pt_tbl], axis=0
    )
    small_tbl = _pad_rows_to(small_tbl, 8).astype(jnp.bfloat16)

    word_tbl = word_emb.astype(jnp.float32)   # stays in HBM (gathered row-by-row)
    gamma2d = ln_gamma.reshape(1, H).astype(jnp.float32)
    beta2d = ln_beta.reshape(1, H).astype(jnp.float32)

    kernel = functools.partial(_bert_embeddings_kernel, eps=layer_norm_eps)

    def const_spec(tbl):
        # Constant across the grid -> single-buffer to save VMEM.
        return pl.BlockSpec(tbl.shape, lambda i, wid: (0, 0),
                            pipeline_mode=pl.Buffered(1))

    out = pl.pallas_call(
        kernel,
        out_shape=jax.ShapeDtypeStruct((Np, H), jnp.float32),
        grid_spec=pltpu.PrefetchScalarGridSpec(
            num_scalar_prefetch=1,                     # word ids -> SMEM
            grid=(n_tiles,),
            in_specs=[
                pl.BlockSpec((ts, 3), lambda i, wid: (i, 0)),   # small-table ids
                pl.BlockSpec(memory_space=pl.ANY),              # word table (HBM)
                const_spec(small_tbl),                          # concat small tables
                const_spec(gamma2d),
                const_spec(beta2d),
            ],
            out_specs=pl.BlockSpec((ts, H), lambda i, wid: (i, 0)),
            scratch_shapes=[
                pltpu.VMEM((ts, H), jnp.float32),               # DMA landing buffer
                pltpu.SemaphoreType.DMA((nbuf,)),               # DMA semaphore ring
            ],
        ),
        compiler_params=pltpu.CompilerParams(
            dimension_semantics=("parallel",),                  # megacore-friendly
            vmem_limit_bytes=48 * 1024 * 1024,
        ),
    )(word_ids, other_ids, word_tbl, small_tbl, gamma2d, beta2d)

    return out[:N].reshape(B, S, H)


def _reference(input_ids, word_emb, pos_emb, tt_emb, pt_emb, gamma, beta,
               token_type_ids, position_ids, pos_tag_id, eps):
    x = (
        word_emb[input_ids]
        + pos_emb[position_ids]
        + tt_emb[token_type_ids]
        + pt_emb[pos_tag_id]
    )
    mean = jnp.mean(x, axis=-1, keepdims=True)
    var = jnp.mean((x - mean) ** 2, axis=-1, keepdims=True)
    return (x - mean) * lax.rsqrt(var + eps) * gamma + beta


if __name__ == "__main__":
    # Small synthetic config (lane-dense H multiple of 128).
    vocab_size = 512
    hidden_size = 128
    max_position_embeddings = 64
    type_vocab_size = 2
    num_pos_tags = 20
    pad_token_id = 0
    layer_norm_eps = 1e-12

    B, S = 2, 50          # 100 tokens -> ts=32, padded to 128, grid of 4 tiles

    key = jax.random.PRNGKey(0)
    (k_word, k_pos, k_tt, k_pt, k_g, k_b,
     k_ids, k_tt_ids, k_pt_ids) = jax.random.split(key, 9)

    def small_table(k, shape):
        # Values rounded to bf16-representable f32 so the in-kernel bf16 MXU
        # multi-hot lookup is bit-exact vs the f32 gather reference.
        t = 0.02 * jax.random.normal(k, shape, jnp.float32)
        return t.astype(jnp.bfloat16).astype(jnp.float32)

    word_emb = 0.02 * jax.random.normal(k_word, (vocab_size, hidden_size), jnp.float32)
    word_emb = word_emb.at[pad_token_id].set(0.0)   # nn.Embedding padding_idx row
    pos_emb = small_table(k_pos, (max_position_embeddings, hidden_size))
    tt_emb = small_table(k_tt, (type_vocab_size, hidden_size))
    pt_emb = small_table(k_pt, (num_pos_tags, hidden_size))
    ln_gamma = 1.0 + 0.1 * jax.random.normal(k_g, (hidden_size,), jnp.float32)
    ln_beta = 0.1 * jax.random.normal(k_b, (hidden_size,), jnp.float32)

    input_ids = jax.random.randint(k_ids, (B, S), 0, vocab_size, dtype=jnp.int32)
    token_type_ids = jax.random.randint(k_tt_ids, (B, S), 0, type_vocab_size, dtype=jnp.int32)
    pos_tag_id = jax.random.randint(k_pt_ids, (B, S), 0, num_pos_tags, dtype=jnp.int32)

    out = bert_embeddings(
        input_ids, word_emb, pos_emb, tt_emb, pt_emb, ln_gamma, ln_beta,
        token_type_ids=token_type_ids, pos_tag_id=pos_tag_id,
        layer_norm_eps=layer_norm_eps,
        token_tile=32, dma_sem_ring=16,
    )
    out = jax.block_until_ready(out)

    position_ids = jnp.broadcast_to(jnp.arange(S, dtype=jnp.int32)[None, :], (B, S))
    ref = _reference(
        input_ids, word_emb, pos_emb, tt_emb, pt_emb, ln_gamma, ln_beta,
        token_type_ids, position_ids, pos_tag_id, layer_norm_eps,
    )

    assert out.shape == (B, S, hidden_size)
    max_err = float(jnp.max(jnp.abs(out - ref)))
    assert max_err < 1e-4, max_err
    print("KERNEL_OK")
</pallas_src>

<mosaic_0001>
module attributes {stable_mosaic.version = 11 : i64} {
  func.func @_bert_embeddings_kernel(%arg0: i32, %arg1: memref<128xi32, #tpu.memory_space<smem>>, %arg2: memref<32x3xi32, #tpu.memory_space<vmem>>, %arg3: memref<512x128xf32, #tpu.memory_space<any>>, %arg4: memref<88x128xbf16, #tpu.memory_space<vmem>>, %arg5: memref<1x128xf32, #tpu.memory_space<vmem>>, %arg6: memref<1x128xf32, #tpu.memory_space<vmem>>, %arg7: memref<32x128xf32, #tpu.memory_space<vmem>>, %arg8: memref<32x128xf32, #tpu.memory_space<vmem>>, %arg9: memref<16x!tpu.dma_semaphore, #tpu.memory_space<semaphore_mem>>) attributes {dimension_semantics = [#tpu.dimension_semantics<parallel>], iteration_bounds = array<i64: 4>, scalar_prefetch = 1 : i64, scratch_operands = 2 : i64, tpu.core_type = #tpu.core_type<tc>, window_params = [{transform_indices = @transform_0, window_bounds = array<i64: 32, 3>}, {}, {pipeline_mode = #tpu.pipeline_mode<synchronous>, transform_indices = @transform_2, window_bounds = array<i64: 88, 128>}, {pipeline_mode = #tpu.pipeline_mode<synchronous>, transform_indices = @transform_3, window_bounds = array<i64: 1, 128>}, {pipeline_mode = #tpu.pipeline_mode<synchronous>, transform_indices = @transform_4, window_bounds = array<i64: 1, 128>}, {transform_indices = @transform_5, window_bounds = array<i64: 32, 128>}]} {
    %c32_i32 = arith.constant 32 : i32
    %0 = arith.muli %arg0, %c32_i32 : i32
    %c0_i32 = arith.constant 0 : i32
    %c32_i32_0 = arith.constant 32 : i32
    %1 = arith.addi %c0_i32, %c32_i32_0 : i32
    %c1_i32 = arith.constant 1 : i32
    scf.for %arg10 = %c0_i32 to %1 step %c1_i32  : i32 {
      %c1_i32_22 = arith.constant 1 : i32
      %48 = arith.muli %arg10, %c1_i32_22 : i32
      %c0_i32_23 = arith.constant 0 : i32
      %49 = arith.addi %c0_i32_23, %48 : i32
      %50 = arith.addi %0, %49 : i32
      %51 = arith.index_cast %50 : i32 to index
      %52 = memref.load %arg1[%51] : memref<128xi32, #tpu.memory_space<smem>>
      %c15_i32 = arith.constant 15 : i32
      %53 = arith.andi %49, %c15_i32 : i32
      %c0_i32_24 = arith.constant 0 : i32
      %54 = tpu.memref_slice %arg3[%52, %c0_i32_24] : memref<512x128xf32, #tpu.memory_space<any>> -> memref<1x128xf32, #tpu.memory_space<any>>
      %c0_i32_25 = arith.constant 0 : i32
      %55 = tpu.memref_slice %arg8[%49, %c0_i32_25] : memref<32x128xf32, #tpu.memory_space<vmem>> -> memref<1x128xf32, #tpu.memory_space<vmem>>
      %56 = tpu.memref_slice %arg9[%53] : memref<16x!tpu.dma_semaphore, #tpu.memory_space<semaphore_mem>> -> memref<1x!tpu.dma_semaphore, #tpu.memory_space<semaphore_mem>>
      %57 = tpu.memref_squeeze %56 : memref<1x!tpu.dma_semaphore, #tpu.memory_space<semaphore_mem>> -> memref<!tpu.dma_semaphore, #tpu.memory_space<semaphore_mem>>
      tpu.enqueue_dma source(%54 : memref<1x128xf32, #tpu.memory_space<any>>) target(%55 : memref<1x128xf32, #tpu.memory_space<vmem>>) target_semaphore(%57 : memref<!tpu.dma_semaphore, #tpu.memory_space<semaphore_mem>>)
    }
    %c32_i32_1 = arith.constant 32 : i32
    %c0 = arith.constant 0 : index
    %c0_2 = arith.constant 0 : index
    %2 = vector.load %arg2[%c0, %c0_2] : memref<32x3xi32, #tpu.memory_space<vmem>>, vector<32x3xi32>
    %3 = tpu.iota {dimensions = array<i32: 1>} : vector<32x88xi32>
    %4 = vector.extract_strided_slice %2 {offsets = [0, 0], sizes = [32, 1], strides = [1, 1]} : vector<32x3xi32> to vector<32x1xi32>
    %5 = vector.broadcast %4 : vector<32x1xi32> to vector<32x88xi32>
    %6 = arith.cmpi eq, %5, %3 : vector<32x88xi32>
    %7 = vector.extract_strided_slice %2 {offsets = [0, 1], sizes = [32, 1], strides = [1, 1]} : vector<32x3xi32> to vector<32x1xi32>
    %8 = vector.broadcast %7 : vector<32x1xi32> to vector<32x88xi32>
    %9 = arith.cmpi eq, %8, %3 : vector<32x88xi32>
    %10 = arith.ori %6, %9 : vector<32x88xi1>
    %11 = vector.extract_strided_slice %2 {offsets = [0, 2], sizes = [32, 1], strides = [1, 1]} : vector<32x3xi32> to vector<32x1xi32>
    %12 = vector.broadcast %11 : vector<32x1xi32> to vector<32x88xi32>
    %13 = arith.cmpi eq, %12, %3 : vector<32x88xi32>
    %14 = arith.ori %10, %13 : vector<32x88xi1>
    %15 = arith.extui %14 : vector<32x88xi1> to vector<32x88xi32>
    %16 = arith.sitofp %15 : vector<32x88xi32> to vector<32x88xf32>
    %17 = arith.truncf %16 : vector<32x88xf32> to vector<32x88xbf16>
    %c0_3 = arith.constant 0 : index
    %c0_4 = arith.constant 0 : index
    %18 = vector.load %arg4[%c0_3, %c0_4] : memref<88x128xbf16, #tpu.memory_space<vmem>>, vector<88x128xbf16>
    %cst = arith.constant dense<0.000000e+00> : vector<32x128xf32>
    %19 = tpu.matmul %17, %18, %cst {dimension_numbers = #tpu.dot_dimension_numbers<[1], [0], [0], [1], [0, 0, 1, 1], [], []>} : vector<32x88xbf16>, vector<88x128xbf16>, vector<32x128xf32> -> vector<32x128xf32>
    %c0_i32_5 = arith.constant 0 : i32
    %c32_i32_6 = arith.constant 32 : i32
    %20 = arith.addi %c0_i32_5, %c32_i32_6 : i32
    %c1_i32_7 = arith.constant 1 : i32
    scf.for %arg10 = %c0_i32_5 to %20 step %c1_i32_7  : i32 {
      %c1_i32_22 = arith.constant 1 : i32
      %48 = arith.muli %arg10, %c1_i32_22 : i32
      %c0_i32_23 = arith.constant 0 : i32
      %49 = arith.addi %c0_i32_23, %48 : i32
      %c15_i32 = arith.constant 15 : i32
      %50 = arith.andi %49, %c15_i32 : i32
      %c0_i32_24 = arith.constant 0 : i32
      %c0_i32_25 = arith.constant 0 : i32
      %51 = tpu.memref_slice %arg3[%c0_i32_24, %c0_i32_25] : memref<512x128xf32, #tpu.memory_space<any>> -> memref<1x128xf32, #tpu.memory_space<any>>
      %c0_i32_26 = arith.constant 0 : i32
      %52 = tpu.memref_slice %arg8[%49, %c0_i32_26] : memref<32x128xf32, #tpu.memory_space<vmem>> -> memref<1x128xf32, #tpu.memory_space<vmem>>
      %53 = tpu.memref_slice %arg9[%50] : memref<16x!tpu.dma_semaphore, #tpu.memory_space<semaphore_mem>> -> memref<1x!tpu.dma_semaphore, #tpu.memory_space<semaphore_mem>>
      %54 = tpu.memref_squeeze %53 : memref<1x!tpu.dma_semaphore, #tpu.memory_space<semaphore_mem>> -> memref<!tpu.dma_semaphore, #tpu.memory_space<semaphore_mem>>
      tpu.wait_dma2 semaphore(%54 : memref<!tpu.dma_semaphore, #tpu.memory_space<semaphore_mem>>) src(%51 : memref<1x128xf32, #tpu.memory_space<any>>) dst(%52 : memref<1x128xf32, #tpu.memory_space<vmem>>)
    }
    %c32_i32_8 = arith.constant 32 : i32
    %c0_9 = arith.constant 0 : index
    %c0_10 = arith.constant 0 : index
    %21 = vector.load %arg8[%c0_9, %c0_10] : memref<32x128xf32, #tpu.memory_space<vmem>>, vector<32x128xf32>
    %22 = arith.addf %21, %19 : vector<32x128xf32>
    %cst_11 = arith.constant dense<0.000000e+00> : vector<32xf32>
    %23 = vector.multi_reduction <add>, %22, %cst_11 [1] : vector<32x128xf32> to vector<32xf32>
    %24 = vector.shape_cast %23 : vector<32xf32> to vector<32x1xf32>
    %cst_12 = arith.constant 7.812500e-03 : f32
    %25 = vector.broadcast %cst_12 : f32 to vector<32x1xf32>
    %26 = arith.mulf %24, %25 : vector<32x1xf32>
    %27 = arith.mulf %22, %22 : vector<32x128xf32>
    %cst_13 = arith.constant dense<0.000000e+00> : vector<32xf32>
    %28 = vector.multi_reduction <add>, %27, %cst_13 [1] : vector<32x128xf32> to vector<32xf32>
    %29 = vector.shape_cast %28 : vector<32xf32> to vector<32x1xf32>
    %cst_14 = arith.constant 7.812500e-03 : f32
    %30 = vector.broadcast %cst_14 : f32 to vector<32x1xf32>
    %31 = arith.mulf %29, %30 : vector<32x1xf32>
    %32 = arith.mulf %26, %26 : vector<32x1xf32>
    %33 = arith.subf %31, %32 : vector<32x1xf32>
    %34 = vector.broadcast %26 : vector<32x1xf32> to vector<32x128xf32>
    %35 = arith.subf %22, %34 : vector<32x128xf32>
    %cst_15 = arith.constant 9.99999996E-13 : f32
    %36 = vector.broadcast %cst_15 : f32 to vector<32x1xf32>
    %37 = arith.addf %33, %36 : vector<32x1xf32>
    %38 = math.rsqrt %37 : vector<32x1xf32>
    %39 = vector.broadcast %38 : vector<32x1xf32> to vector<32x128xf32>
    %40 = arith.mulf %35, %39 : vector<32x128xf32>
    %c0_16 = arith.constant 0 : index
    %c0_17 = arith.constant 0 : index
    %41 = vector.load %arg5[%c0_16, %c0_17] : memref<1x128xf32, #tpu.memory_space<vmem>>, vector<1x128xf32>
    %42 = vector.broadcast %41 : vector<1x128xf32> to vector<32x128xf32>
    %43 = arith.mulf %40, %42 : vector<32x128xf32>
    %c0_18 = arith.constant 0 : index
    %c0_19 = arith.constant 0 : index
    %44 = vector.load %arg6[%c0_18, %c0_19] : memref<1x128xf32, #tpu.memory_space<vmem>>, vector<1x128xf32>
    %45 = vector.broadcast %44 : vector<1x128xf32> to vector<32x128xf32>
    %46 = arith.addf %43, %45 : vector<32x128xf32>
    %c0_20 = arith.constant 0 : index
    %c0_21 = arith.constant 0 : index
    %47 = vector.load %arg7[%c0_20, %c0_21] : memref<32x128xf32, #tpu.memory_space<vmem>>, vector<32x128xf32>
    tpu.vector_store %arg7[%c0_20, %c0_21], %46 {strides = array<i32>} : memref<32x128xf32, #tpu.memory_space<vmem>>, vector<32x128xf32>,
    return
  }
  func.func @transform_0(%arg0: i32, %arg1: memref<128xi32, #tpu.memory_space<smem>>) -> (i32, i32) {
    %c0_i32 = arith.constant 0 : i32
    %c0_i32_0 = arith.constant 0 : i32
    return %arg0, %c0_i32 : i32, i32
  }
  func.func @transform_2(%arg0: i32, %arg1: memref<128xi32, #tpu.memory_space<smem>>) -> (i32, i32) {
    %c0_i32 = arith.constant 0 : i32
    %c0_i32_0 = arith.constant 0 : i32
    %c0_i32_1 = arith.constant 0 : i32
    return %c0_i32, %c0_i32_0 : i32, i32
  }
  func.func @transform_3(%arg0: i32, %arg1: memref<128xi32, #tpu.memory_space<smem>>) -> (i32, i32) {
    %c0_i32 = arith.constant 0 : i32
    %c0_i32_0 = arith.constant 0 : i32
    %c0_i32_1 = arith.constant 0 : i32
    return %c0_i32, %c0_i32_0 : i32, i32
  }
  func.func @transform_4(%arg0: i32, %arg1: memref<128xi32, #tpu.memory_space<smem>>) -> (i32, i32) {
    %c0_i32 = arith.constant 0 : i32
    %c0_i32_0 = arith.constant 0 : i32
    %c0_i32_1 = arith.constant 0 : i32
    return %c0_i32, %c0_i32_0 : i32, i32
  }
  func.func @transform_5(%arg0: i32, %arg1: memref<128xi32, #tpu.memory_space<smem>>) -> (i32, i32) {
    %c0_i32 = arith.constant 0 : i32
    %c0_i32_0 = arith.constant 0 : i32
    return %arg0, %c0_i32 : i32, i32
  }
}

</mosaic_0001>

<bundles_post_ra>
// kernel: tpu_custom_call.1
= control target key start
LH: loop header
LB: loop body
LE: loop exit
PB: predicated region body
PF: predicated region fallthrough
CT: control target
= control target key end

     0   :  { %s979_s24 = smov [#allocation5]   ;;  %s1211_s0 = inlined_call_operand.vmem [shape: s32[128], index: 0, kind: input, shape index: {}]   ;;  %s1212_s1 = inlined_call_operand.vmem [shape: s32[128,3], index: 1, kind: input, shape index: {}]   ;;  %s1213_s2 = inlined_call_operand.hbm [shape: f32[512,128], index: 2, kind: input, shape index: {}]   ;;  %s1214_s3 = inlined_call_operand.vmem [shape: bf16[88,128], index: 3, kind: input, shape index: {}]   ;;  %s1215_s4 = inlined_call_operand.vmem [shape: f32[1,128], index: 4, kind: input, shape index: {}]   ;;  %s1216_s5 = inlined_call_operand.vmem [shape: f32[1,128], index: 5, kind: input, shape index: {}]   ;;  %s1217_s6 = inlined_call_operand.hbm [shape: f32[128,128], index: 6, kind: output, shape index: {}]  }
   0x1   :  { %1219 = sst [smem:[#allocation16_spill]] %s1212_s1  ;;  %s12_s23 = sshll.u32 %s1211_s0, 4  ;;  %s13_s23 = int_to_ptr.vmem [resolvable:$true] %s12_s23 }
   0x2   :  { %15 = dma.vmem_to_smem %s13_s23, 16, %s979_s24, [#allocation4] }
   0x3   :  { %947 = dma.done.wait [#allocation4], 16 }
   0x4   :  { %948 = vsyncadd [#allocation4], 4294967280 }
   0x5   :  { %18 = sfence }
   0x6   :  { %19 = vsyncpa [#allocation7], 0 }
   0x7   :  { %21 = vsyncpa [#allocation7 + $0x1], 0  ;;  %s1025_s25 = smov 0   ;;  %s1027_s26 = smov 0  }
   0x8   :  { %s1029_s27 = smov 0   ;;  %s1031_s28 = smov 0  }
   0x9 LB: > { %s1046_s0 = sadd.s32 4294967295, %s969_s28   ;;  %s712_s29 = sadd.s32 4294967294, %s969_s28   ;;  %s969_s28 = sphi %s1031_s28, %s1231_s28   ;;  %s965_s27 = sphi %s1029_s27, %s1230_s27   ;;  %s961_s26 = sphi %s1027_s26, %s1229_s26   ;;  %s957_s25 = sphi %s1025_s25, %s1228_s25  }
   0xa   : > { %s1050_s30 = sadd.s32 1, %s969_s28   ;;  %s123_s7 = sadd.s32 1, %s965_s27 }
   0xb   : > { %s120_s8 = ssub.s32 %s969_s28, %s1050_s30  ;;  %p133_p0 = scmp.ne.s32.totalorder %s965_s27, %s961_s26 }
   0xc   : > { %p121_p1 = scmp.eq.s32.totalorder %s120_s8, 0  ;;  %p134_p2 = scmp.eq.s32.totalorder %s1046_s0, 3 }
   0xd   : > { %p139_p3 = scmp.ne.s32.totalorder %s961_s26, %s957_s25  ;;  %p140_p4 = scmp.eq.s32.totalorder %s712_s29, 3 }
   0xe   : > { %s1061_s9 = scalar_select %p121_p1, %s965_s27, %s123_s7  }
   0xf   : > { %p1063_p5 = por %p134_p2, %p133_p0  ;;  %p1067_p6 = por %p140_p4, %p139_p3 }
  0x10   : > { %1220 = sst [smem:[#allocation15_spill]] %s1061_s9  ;;  %p715_p7 = scmp.ge.s32.totalorder %s969_s28, 1 }
  0x11   : > { %p176_p8 = scmp.lt.s32.totalorder %s969_s28, 5 }
  0x13   : > { %p177_p9 = pnand %p715_p7, %p176_p8 }
  0x14   : > { %s1218_s12 = sand.u32 (!%p177_p9), 1, %s961_s26   ;;  %s717_s13 = sshll.u32 (!%p177_p9), %s1046_s0, 2 }
  0x15   : > { %180 = sbr.rel (%p177_p9) target bundleno = 519 (0x207), region = 36  ;;  %s716_s14 = sshll.u32 (!%p177_p9), %s1218_s12, 5 }
  0x16   : > { %p203_p10 = scmp.lt.s32.totalorder (!%p177_p9), %s717_s13, 15  ;;  %s1223_s1 = sld [smem:[#allocation16_spill]] (!%p177_p9) }
  0x17   : > { %s1083_s20 = scalar_lea.vmem (!%p177_p9), [#allocation6], %s716_s14  ;;  %s1085_s21 = smov (!%p177_p9), 0  }
  0x1a   : > { %s1233_s13 = smov (!%p203_p10, %s717_s13), 15 }
  0x1b   : > { %s718_s16 = sshll.u32 %s1233_s13, 3 }
  0x1c   : > { %s1081_s19 = scalar_lea.vmem %s1223_s1, %s718_s16 }
  0x1d LB: >> { %s1224_s15 = sshll.u32 %s1046_s0, 5  ;;  %s219_s24 = sand.u32 15, %s973_s21  ;;  %s973_s21 = sphi %s1085_s21, %s216_s21  }
  0x1e   : >> { %s217_s22 = sadd.s32 %s973_s21, %s1224_s15  ;;  %s221_s29 = scalar_lea.vmem [#allocation2], %s973_s21 }
  0x1f   : >> { %s218_s23 = sld [smem:[#allocation5 + %s217_s22]]  ;;  %s1095_s7 = sshll.u32 %s221_s29, 4  ;;  %s233_s7 = int_to_ptr.vmem [resolvable:$true] %s1095_s7 }
  0x20   : >> { %s222_s17 = scalar_lea.sflag [#allocation3], %s219_s24  ;;  %s875_s22 = scalar_lea.hbm %s1213_s2, 512 }
  0x25   : >> { %s220_s14 = scalar_lea.hbm %s1213_s2, %s218_s23 }
  0x26   : >> { %s230_s16 = sshll.u32 %s220_s14, 4  ;;  %s231_s16 = int_to_ptr.hbm [resolvable:$true] %s230_s16 }
  0x27   : >> { %s871_s18 = sshra.s32 %s231_s16, 4  ;;  %s872_s18 = int_to_ptr.hbm [resolvable:$true] %s871_s18 }
  0x28   : >> { %s873_s12 = scalar_lea.hbm %s872_s18, 1  ;;  %p876_p12 = scmp.lt.s32.totalorder %s872_s18, %s1213_s2 }
  0x29   : >> { %p874_p11 = scmp.ne.s32.totalorder %s872_s18, %s873_s12  ;;  %p877_p13 = scmp.lt.s32.totalorder %s875_s22, %s873_s12 }
  0x2b   : >> { %p878_p0 = por %p877_p13, %p876_p12 }
  0x2d   : >> { %p879_p1 = pnand %p878_p0, %p874_p11 }
  0x2f   : >> { %882 = shalt.err (!%p879_p1)  }
  0x30   : >> { %s883_s23 = sshra.s32 %s233_s7, 4  ;;  %s980_s24 = smov [#allocation2]   ;;  %s884_s23 = int_to_ptr.vmem [resolvable:$true] %s883_s23 }
  0x31   : >> { %s885_s8 = scalar_lea.vmem %s884_s23, 1  ;;  %s887_s13 = scalar_lea.vmem %s980_s24, 32 }
  0x32   : >> { %p886_p2 = scmp.ne.s32.totalorder %s884_s23, %s885_s8  ;;  %p888_p3 = scmp.lt.s32.totalorder %s884_s23, [#allocation2] }
  0x33   : >> { %p889_p4 = scmp.lt.s32.totalorder %s887_s13, %s885_s8 }
  0x35   : >> { %p890_p7 = por %p889_p4, %p888_p3 }
  0x37   : >> { %p891_p8 = pnand %p890_p7, %p886_p2 }
  0x39   : >> { %894 = shalt.err (!%p891_p8)  }
  0x3a   : >> { %235 = dma.hbm_to_vmem [thread:$0]  %s231_s16, 16, %s233_s7, %s222_s17 }
  0x3b   : >> { %s216_s21 = sadd.s32 1, %s973_s21  }
  0x3c   : >> { %p213_p9 = scmp.ge.s32.totalorder %s216_s21, 32  }
  0x3d   : > { %v238_v0 = vld [vmem:[%s1081_s19 + $0x10] sm:$0xff] (%p213_p9)  ;;  %v236_v1 = vld [vmem:[%s1081_s19] sm:$0xff] (%p213_p9)  ;;  %v981_v2 = vmov (%p213_p9), 0   ;;  %v982_v3 = vmov (%p213_p9), 1   ;;  %v239_v4 = vld [vmem:[%s1081_s19 + $0x18] sm:$0xff] (%p213_p9)  ;;  %v983_v6 = vmov (%p213_p9), 2   ;;  %v240_v22 = vlaneseq (%p213_p9) }
  0x3e   : > { %215 = sbr.rel (!%p213_p9) target bundleno = 29 (0x1d), region = 108  ;;  %842 = vset.pattern.permute.xlu1 (%p213_p9), %v981_v2  ;;  %841 = vset.pattern.permute.xlu0 (%p213_p9), %v981_v2  ;;  %v237_v5 = vld [vmem:[%s1081_s19 + $0x8] sm:$0xff] (%p213_p9)  ;;  %vm359_vm0 = vcmask (%p213_p9), 1043456   ;;  %v771_v11 = vld [vmem:[%s1214_s3 + $0x20] sm:$0xff] (%p213_p9)  ;;  %v770_v12 = vld [vmem:[%s1214_s3 + $0x18] sm:$0xff] (%p213_p9)  ;;  %v984_v30 = vmov (%p213_p9), 0.0  }
  0x3f   : > { %249 = vperm.xlu1 (%p213_p9), %842, %v238_v0   ;;  %243 = vperm.xlu0 (%p213_p9), %841, %v236_v1   ;;  %v318_v7 = vld [vmem:[%s1214_s3 + $0x28] sm:$0xf] (%p213_p9)  ;;  %v769_v13 = vld [vmem:[%s1214_s3 + $0x10] sm:$0xff] (%p213_p9)  ;;  %v767_v16 = vld [vmem:[%s1214_s3] sm:$0xff] (%p213_p9)  ;;  %v241_v23 = vand.u32 (%p213_p9), 127, %v240_v22  ;;  %s975_s29 = smov (%p213_p9), 0  }
  0x40   : > { %843 = vset.pattern.permute.xlu2 (%p213_p9), %v982_v3  ;;  %v340_v8 = vunpack.c.l.b16 (%p213_p9), %v318_v7  ;;  %v768_v14 = vld [vmem:[%s1214_s3 + $0x8] sm:$0xff] (%p213_p9) }
  0x41   : > { %259 = vperm.xlu2 (%p213_p9), %843, %v236_v1  }
  0x42   : > { %v346_v9 = vpack.c.b16 (%p213_p9), %v340_v8, %v340_v8 }
  0x44   : > { %v361_v10 = vsel %vm359_vm0, %v346_v9, 0 }
  0x45   : > { %365 = vmatpush.bf16.msra.mxu0 %v361_v10  ;;  %773 = vmatpush.bf16.msra.mxu1 %v361_v10 }
  0x47   : > { %252 = vperm.xlu1 %842, %v239_v4   ;;  %246 = vperm.xlu0 %841, %v237_v5  }
  0x49   : > { %262 = vperm.xlu2 %843, %v237_v5   ;;  %366 = vmatpush.bf16.msra.mxu0 %v771_v11 }
  0x4a   : > { %774 = vmatpush.bf16.msra.mxu1 %v771_v11 }
  0x4d   : > { %367 = vmatpush.bf16.msra.mxu0 %v770_v12 }
  0x4e   : > { %775 = vmatpush.bf16.msra.mxu1 %v770_v12 }
  0x4f   : > { %845 = vset.pattern.permute.xlu1 %v982_v3  ;;  %844 = vset.pattern.permute.xlu0 %v982_v3 }
  0x50   : > { %268 = vperm.xlu1 %845, %v239_v4   ;;  %265 = vperm.xlu0 %844, %v238_v0  }
  0x51   : > { %846 = vset.pattern.permute.xlu2 %v983_v6  ;;  %368 = vmatpush.bf16.msra.mxu0 %v769_v13 }
  0x52   : > { %279 = vperm.xlu2 %846, %v236_v1   ;;  %776 = vmatpush.bf16.msra.mxu1 %v769_v13 }
  0x55   : > { %369 = vmatpush.bf16.msra.mxu0 %v768_v14 }
  0x56   : > { %777 = vmatpush.bf16.msra.mxu1 %v768_v14 }
  0x58   : > { %847 = vset.pattern.permute.xlu1 %v983_v6  ;;  %848 = vset.pattern.permute.xlu0 %v983_v6 }
  0x59   : > { %282 = vperm.xlu1 %847, %v237_v5   ;;  %288 = vperm.xlu0 %848, %v239_v4  }
  0x5a   : > { %285 = vperm.xlu2 %846, %v238_v0   ;;  %370 = vmatpush.bf16.msra.mxu0 %v767_v16 }
  0x5b   : > { %778 = vmatpush.bf16.msra.mxu1 %v767_v16 }
  0x9b   : > { %v260_v15 = vpop.permute.xlu2 %259 }
  0x9c   : > { %vm270_vm1 = vcmp.eq.s32.totalorder %v260_v15, %v241_v23 }
  0xa3   : > { %v263_v19 = vpop.permute.xlu2 %262 }
  0xa4   : > { %vm271_vm10 = vcmp.eq.s32.totalorder %v263_v19, %v241_v23 }
  0xac   : > { %v280_v24 = vpop.permute.xlu2 %279 }
  0xad   : > { %vm290_vm4 = vcmp.eq.s32.totalorder %v280_v24, %v241_v23 }
  0xb1   : > { %v250_v17 = vpop.permute.xlu1 %249  ;;  %v244_v18 = vpop.permute.xlu0 %243 }
  0xb2   : > { %vm254_vm2 = vcmp.eq.s32.totalorder %v244_v18, %v241_v23  ;;  %vm256_vm7 = vcmp.eq.s32.totalorder %v250_v17, %v241_v23 }
  0xb3   : > { %vm274_vm3 = vmor %vm254_vm2, %vm270_vm1 }
  0xb4   : > { %v286_v27 = vpop.permute.xlu2 %285  ;;  %vm294_vm8 = vmor %vm274_vm3, %vm290_vm4 }
  0xb5   : > { %vm292_vm12 = vcmp.eq.s32.totalorder %v286_v27, %v241_v23  ;;  %v720_v31 = vsel %vm294_vm8, 1.0, %v984_v30 }
  0xb9   : > { %v253_v20 = vpop.permute.xlu1 %252  ;;  %v247_v21 = vpop.permute.xlu0 %246 }
  0xba   : > { %vm255_vm6 = vcmp.eq.s32.totalorder %v247_v21, %v241_v23  ;;  %vm257_vm13 = vcmp.eq.s32.totalorder %v253_v20, %v241_v23 }
  0xbb   : > { %vm275_vm14 = vmor %vm255_vm6, %vm271_vm10 }
  0xc2   : > { %v269_v25 = vpop.permute.xlu1 %268  ;;  %v266_v26 = vpop.permute.xlu0 %265 }
  0xc3   : > { %vm272_vm5 = vcmp.eq.s32.totalorder %v266_v26, %v241_v23  ;;  %vm273_vm9 = vcmp.eq.s32.totalorder %v269_v25, %v241_v23 }
  0xc4   : > { %vm276_vm11 = vmor %vm256_vm7, %vm272_vm5  ;;  %vm352_vm5 = vcmask 719872  }
  0xc5   : > { %vm277_vm15 = vmor %vm257_vm13, %vm273_vm9 }
  0xc6   : > { %vm296_vm0 = vmor %vm276_vm11, %vm292_vm12 }
  0xc7   : > { %v722_v33 = vsel %vm296_vm0, 1.0, %v984_v30 }
  0xcb   : > { %v283_v28 = vpop.permute.xlu1 %282  ;;  %v289_v29 = vpop.permute.xlu0 %288 }
  0xcc   : > { %vm291_vm1 = vcmp.eq.s32.totalorder %v283_v28, %v241_v23  ;;  %vm293_vm2 = vcmp.eq.s32.totalorder %v289_v29, %v241_v23 }
  0xcd   : > { %vm295_vm3 = vmor %vm275_vm14, %vm291_vm1 }
  0xce   : > { %v721_v32 = vsel %vm295_vm3, 1.0, %v984_v30  ;;  %vm297_vm4 = vmor %vm277_vm15, %vm293_vm2 }
  0xcf   : > { %v306_v34 = vpack.c.bf16 %v721_v32, %v720_v31  ;;  %v723_v35 = vsel %vm297_vm4, 1.0, %v984_v30 }
  0xd0   : > { %v307_v36 = vpack.c.bf16 %v723_v35, %v722_v33 }
  0xd1   : > { %744 = vmatmul.msk.bf16.vlgmr.msra.gmra.mxu0 %vm352_vm5, %v306_v34 }
  0xd2   : > { %745 = vmatmul.msk.bf16.vlgmr.msra.gmra.mxu1 %vm352_vm5, %v307_v36 }
 0x14e   : > { %v372_v37 = vpop.f32.mrf.mxu0 }
 0x14f   : > { %v377_v38 = vpop.f32.mrf.mxu1 }
 0x156   : > { %v374_v39 = vpop.f32.mrf.mxu0 }
 0x157   : > { %v379_v40 = vpop.f32.mrf.mxu1 }
 0x158 LB: >> { %s388_s23 = sand.u32 15, %s977_s29  ;;  %s977_s29 = sphi %s975_s29, %s387_s29  }
 0x159   : >> { %s389_s8 = scalar_lea.sflag [#allocation3], %s388_s23 }
 0x15a   : >> { %949 = dma.done.wait %s389_s8, 16 }
 0x15b   : >> { %950 = vsyncadd %s389_s8, 4294967280  ;;  %s387_s29 = sadd.s32 1, %s977_s29  }
 0x15c   : >> { %p384_p10 = scmp.ge.s32.totalorder %s387_s29, 32  }
 0x15d   : > { %v395_v41 = vld [vmem:[#allocation2 + $0x10] sm:$0xff] (%p384_p10)  ;;  %v393_v42 = vld [vmem:[#allocation2] sm:$0xff] (%p384_p10)  ;;  %v394_v45 = vld [vmem:[#allocation2 + $0x8] sm:$0xff] (%p384_p10)  ;;  %s1225_s12 = sshll.u32 (%p384_p10), %s1046_s0, 5  ;;  %s522_s7 = sshll.u32 (%p384_p10), %s1083_s20, 4  ;;  %s523_s7 = int_to_ptr.vmem [resolvable:$true] %s522_s7 }
 0x15e   : > { %386 = sbr.rel (!%p384_p10) target bundleno = 344 (0x158), region = 119  ;;  %v1132_v43 = vadd.f32 (%p384_p10), %v395_v41, %v377_v38  ;;  %v1134_v44 = vadd.f32 (%p384_p10), %v393_v42, %v372_v37  ;;  %v396_v47 = vld [vmem:[#allocation2 + $0x18] sm:$0xff] (%p384_p10)  ;;  %v1140_v48 = vadd.f32 (%p384_p10), %v394_v45, %v374_v39  ;;  %v849_v26 = vld [vmem:[%s1215_s4] ss:$0 sm:$0xff] (%p384_p10)  ;;  %s521_s21 = scalar_lea.hbm (%p384_p10), %s1217_s6, %s1225_s12 }
 0x15f   : > { %v1142_v49 = vadd.f32 (%p384_p10), %v396_v47, %v379_v40  ;;  %v850_v29 = vld [vmem:[%s1216_s5] ss:$0 sm:$0xff] (%p384_p10)  ;;  %s524_s0 = sshll.u32 (%p384_p10), %s521_s21, 4  ;;  %s1226_s14 = sand.u32 (%p384_p10), 1, %s961_s26   ;;  %s525_s0 = int_to_ptr.hbm [resolvable:$true] %s524_s0 }
 0x160   : > { %405 = vadd.xlane.f32.xlu1 (%p384_p10), %v1132_v43  ;;  %401 = vadd.xlane.f32.xlu0 (%p384_p10), %v1134_v44  ;;  %v413_v46 = vmul.f32 (%p384_p10), %v1134_v44, %v1134_v44  ;;  %v414_v50 = vmul.f32 (%p384_p10), %v1140_v48, %v1140_v48  ;;  %v415_v52 = vmul.f32 (%p384_p10), %v1132_v43, %v1132_v43  ;;  %s510_s16 = scalar_lea.sflag (%p384_p10), [#allocation7], %s1226_s14  ;;  %s909_s17 = sshra.s32 (%p384_p10), %s525_s0, 4  ;;  %s910_s17 = int_to_ptr.hbm [resolvable:$true] %s909_s17 }
 0x161   : > { %v416_v51 = vmul.f32 (%p384_p10), %v1142_v49, %v1142_v49  ;;  %s911_s18 = scalar_lea.hbm (%p384_p10), %s910_s17, 32  ;;  %s915_s23 = scalar_lea.hbm (%p384_p10), %s1217_s6, 128 }
 0x162   : > { %417 = vadd.xlane.f32.xlu2 (%p384_p10), %v413_v46  ;;  %p912_p11 = scmp.ne.s32.totalorder (%p384_p10), %s910_s17, %s911_s18  ;;  %p916_p0 = scmp.lt.s32.totalorder (%p384_p10), %s910_s17, %s1217_s6 }
 0x163   : > { %p917_p1 = scmp.lt.s32.totalorder %s915_s23, %s911_s18 }
 0x164   : > { %p913_p12 = pnand %p912_p11, %p1063_p5 }
 0x165   : > { %p918_p2 = por %p917_p1, %p916_p0 }
 0x166   : > { %p914_p13 = pneg %p913_p12 }
 0x168   : > { %407 = vadd.xlane.f32.xlu1 %v1142_v49  ;;  %403 = vadd.xlane.f32.xlu0 %v1140_v48  ;;  %p919_p3 = pnand %p918_p2, %p914_p13 }
 0x16a   : > { %419 = vadd.xlane.f32.xlu2 %v414_v50 }
 0x170   : > { %423 = vadd.xlane.f32.xlu1 %v416_v51  ;;  %421 = vadd.xlane.f32.xlu0 %v415_v52 }
 0x1d3   : > { %v406_v53 = vpop.xlane.xlu1 %405  ;;  %v402_v54 = vpop.xlane.xlu0 %401 }
 0x1d4   : > { %v409_v55 = vmul.f32 0.0078125, %v402_v54  ;;  %v1152_v2 = vmul.f32 0.0078125, %v406_v53 }
 0x1d5   : > { %v418_v56 = vpop.xlane.xlu2 %417 }
 0x1d6   : > { %v429_v57 = vmul.f32 %v409_v55, %v409_v55  ;;  %v425_v58 = vmul.f32 0.0078125, %v418_v56  ;;  %v431_v7 = vmul.f32 %v1152_v2, %v1152_v2  ;;  %v437_v25 = vsub.f32 %v1134_v44, %v409_v55 }
 0x1d7   : > { %v439_v55 = vsub.f32 %v1132_v43, %v1152_v2 }
 0x1d8   : > { %v433_v59 = vsub.f32 %v425_v58, %v429_v57 }
 0x1da   : > { %v441_v60 = vadd.f32 1e-12, %v433_v59 }
 0x1db   : > { %v408_v61 = vpop.xlane.xlu1 %407  ;;  %v404_v62 = vpop.xlane.xlu0 %403 }
 0x1dc   : > { %v410_v63 = vmul.f32 0.0078125, %v404_v62  ;;  %851 = vrsqrt.f32 %v441_v60  ;;  %v1154_v4 = vmul.f32 0.0078125, %v408_v61  ;;  %vm451_vm7 = vweird.f32 %v441_v60 }
 0x1dd   : > { %v420_v0 = vpop.xlane.xlu2 %419 }
 0x1de   : > { %v430_v1 = vmul.f32 %v410_v63, %v410_v63  ;;  %v426_v3 = vmul.f32 0.0078125, %v420_v0  ;;  %v432_v12 = vmul.f32 %v1154_v4, %v1154_v4  ;;  %v438_v42 = vsub.f32 %v1140_v48, %v410_v63 }
 0x1df   : > { %v440_v54 = vsub.f32 %v1142_v49, %v1154_v4 }
 0x1e0   : > { %v434_v5 = vsub.f32 %v426_v3, %v430_v1 }
 0x1e2   : > { %v852_v6 = vpop.eup %851  ;;  %v442_v8 = vadd.f32 1e-12, %v434_v5 }
 0x1e3   : > { %v424_v9 = vpop.xlane.xlu1 %423  ;;  %v422_v10 = vpop.xlane.xlu0 %421  ;;  %v446_v11 = vmul.f32 %v852_v6, %v441_v60  ;;  %vm452_vm6 = vweird.f32 %v852_v6 }
 0x1e4   : > { %v428_v13 = vmul.f32 0.0078125, %v424_v9  ;;  %v427_v14 = vmul.f32 0.0078125, %v422_v10  ;;  %853 = vrsqrt.f32 %v442_v8  ;;  %vm453_vm8 = vmor %vm451_vm7, %vm452_vm6  ;;  %vm461_vm10 = vweird.f32 %v442_v8 }
 0x1e5   : > { %v447_v15 = vmul.f32 %v852_v6, %v446_v11 }
 0x1e6   : > { %v436_v16 = vsub.f32 %v428_v13, %v432_v12  ;;  %v435_v17 = vsub.f32 %v427_v14, %v431_v7 }
 0x1e7   : > { %v448_v18 = vmul.f32 0.5, %v447_v15 }
 0x1e8   : > { %v444_v19 = vadd.f32 1e-12, %v436_v16  ;;  %v443_v20 = vadd.f32 1e-12, %v435_v17 }
 0x1e9   : > { %v449_v21 = vsub.f32 1.5, %v448_v18 }
 0x1ea   : > { %855 = vrsqrt.f32 %v444_v19  ;;  %v854_v22 = vpop.eup %853  ;;  %vm481_vm14 = vweird.f32 %v444_v19  ;;  %vm471_vm0 = vweird.f32 %v443_v20 }
 0x1eb   : > { %857 = vrsqrt.f32 %v443_v20  ;;  %v450_v23 = vmul.f32 %v852_v6, %v449_v21  ;;  %v456_v24 = vmul.f32 %v854_v22, %v442_v8  ;;  %vm462_vm9 = vweird.f32 %v854_v22 }
 0x1ec   : > { %vm463_vm11 = vmor %vm461_vm10, %vm462_vm9 }
 0x1ed   : > { %v454_v27 = vsel %vm453_vm8, %v852_v6, %v450_v23  ;;  %v457_v28 = vmul.f32 %v854_v22, %v456_v24 }
 0x1ee   : > { %v485_v30 = vmul.f32 %v454_v27, %v437_v25 }
 0x1ef   : > { %v458_v32 = vmul.f32 0.5, %v457_v28 }
 0x1f0   : > { %v856_v31 = vpop.eup %855  ;;  %v493_v34 = vmul.f32 %v849_v26, %v485_v30 }
 0x1f1   : > { %v858_v33 = vpop.eup %857  ;;  %v476_v35 = vmul.f32 %v856_v31, %v444_v19  ;;  %v459_v36 = vsub.f32 1.5, %v458_v32  ;;  %vm482_vm12 = vweird.f32 %v856_v31 }
 0x1f2   : > { %v466_v37 = vmul.f32 %v858_v33, %v443_v20  ;;  %v501_v38 = vadd.f32 %v850_v29, %v493_v34  ;;  %vm472_vm13 = vweird.f32 %v858_v33  ;;  %vm483_vm15 = vmor %vm481_vm14, %vm482_vm12 }
 0x1f3   : > { %v477_v39 = vmul.f32 %v856_v31, %v476_v35  ;;  %v460_v40 = vmul.f32 %v854_v22, %v459_v36  ;;  %vm473_vm1 = vmor %vm471_vm0, %vm472_vm13 }
 0x1f4   : > { %v467_v41 = vmul.f32 %v858_v33, %v466_v37  ;;  %505 = vst [vmem:[%s1083_s20] sm:$0xff] %v501_v38 }
 0x1f5   : > { %v478_v44 = vmul.f32 0.5, %v477_v39  ;;  %v464_v45 = vsel %vm463_vm11, %v854_v22, %v460_v40 }
 0x1f6   : > { %v468_v46 = vmul.f32 0.5, %v467_v41  ;;  %v486_v47 = vmul.f32 %v464_v45, %v438_v42 }
 0x1f7   : > { %v479_v50 = vsub.f32 1.5, %v478_v44 }
 0x1f8   : > { %v469_v51 = vsub.f32 1.5, %v468_v46  ;;  %v494_v52 = vmul.f32 %v849_v26, %v486_v47 }
 0x1f9   : > { %v480_v53 = vmul.f32 %v856_v31, %v479_v50 }
 0x1fa   : > { %v470_v48 = vmul.f32 %v858_v33, %v469_v51  ;;  %v502_v56 = vadd.f32 %v850_v29, %v494_v52 }
 0x1fb   : > { %v484_v57 = vsel %vm483_vm15, %v856_v31, %v480_v53 }
 0x1fc   : > { %v488_v58 = vmul.f32 %v484_v57, %v440_v54  ;;  %v474_v59 = vsel %vm473_vm1, %v858_v33, %v470_v48  ;;  %506 = vst [vmem:[%s1083_s20 + $0x8] sm:$0xff] %v502_v56 }
 0x1fd   : > { %v487_v49 = vmul.f32 %v474_v59, %v439_v55 }
 0x1fe   : > { %v496_v60 = vmul.f32 %v849_v26, %v488_v58 }
 0x1ff   : > { %v495_v61 = vmul.f32 %v849_v26, %v487_v49 }
 0x200   : > { %v504_v62 = vadd.f32 %v850_v29, %v496_v60 }
 0x201   : > { %v503_v63 = vadd.f32 %v850_v29, %v495_v61 }
 0x202   : > { %508 = vst [vmem:[%s1083_s20 + $0x18] sm:$0xff] %v504_v62 }
 0x203   : > { %507 = vst [vmem:[%s1083_s20 + $0x10] sm:$0xff] %v503_v63 }
 0x204   : > { %922 = shalt.err (!%p919_p3)
}
 0x205   : > { %s985_s20 = smov 128   ;;  %s986_s13 = smov 8  }
 0x206   : > { %779 = dma.vmem_to_hbm [thread:$0]  (%p1063_p5), %s523_s7, 512, %s525_s0, %s510_s16, %s985_s20, %s985_s20, %s986_s13  }
 0x207 PF: > { %p785_p4 = scmp.ge.s32.totalorder %s969_s28, 2  ;;  %s539_s1 = sand.u32 1, %s957_s25  }
 0x208   : > { %s540_s9 = scalar_lea.sflag [#allocation7], %s539_s1 }
 0x209   : > { %p782_p7 = pnand %p785_p4, %p1067_p6 }
 0x20b   : > { %p783_p8 = pneg %p782_p7 }
 0x20d   : > { %952 = dma.done.wait (%p783_p8), %s540_s9, 512  }
 0x20e   : > { %954 = vsyncadd (%p783_p8), %s540_s9, 4294966784  ;;  %s1227_s12 = sld [smem:[#allocation15_spill]]  ;;  %p24_p9 = scmp.ge.s32.totalorder %s1050_s30, 6  }
 0x20f   : > { %s1228_s25 = smov %s961_s26  ;;  %s1229_s26 = smov %s965_s27 }
 0x210   : > { %s1231_s28 = smov %s1050_s30  ;;  %26 = sbr.rel (!%p24_p9) target bundleno = 9 (0x9), region = 130 }
 0x214   : > { %s1230_s27 = smov %s1227_s12 }
 0x215   :  { %546 = vsyncpa [#allocation7], 1 }
 0x216   :  { %548 = vsyncpa [#allocation7 + $0x1], 1 }
 0x217   :  { %549 = vsyncmov [#allocation3] }
 0x21a   :  { %s550_s28 = vpop.sfrf %549 }
 0x21b   :  { %p751_p5 = scmp.ne.s32.totalorder %s550_s28, 0 }
 0x21d   :  { %554 = shalt.err (%p751_p5)  }
 0x21e   :  { %556 = vsyncmov [#allocation3 + $0x1] }
 0x221   :  { %s557_s10 = vpop.sfrf %556 }
 0x222   :  { %p752_p6 = scmp.ne.s32.totalorder %s557_s10, 0 }
 0x224   :  { %561 = shalt.err (%p752_p6)  }
 0x225   :  { %563 = vsyncmov [#allocation3 + $0x2] }
 0x228   :  { %s564_s11 = vpop.sfrf %563 }
 0x229   :  { %p753_p10 = scmp.ne.s32.totalorder %s564_s11, 0 }
 0x22b   :  { %568 = shalt.err (%p753_p10)  }
 0x22c   :  { %570 = vsyncmov [#allocation3 + $0x3] }
 0x22f   :  { %s571_s15 = vpop.sfrf %570 }
 0x230   :  { %p754_p11 = scmp.ne.s32.totalorder %s571_s15, 0 }
 0x232   :  { %575 = shalt.err (%p754_p11)  }
 0x233   :  { %577 = vsyncmov [#allocation3 + $0x4] }
 0x236   :  { %s578_s30 = vpop.sfrf %577 }
 0x237   :  { %p755_p12 = scmp.ne.s32.totalorder %s578_s30, 0 }
 0x239   :  { %582 = shalt.err (%p755_p12)  }
 0x23a   :  { %584 = vsyncmov [#allocation3 + $0x5] }
 0x23d   :  { %s585_s2 = vpop.sfrf %584 }
 0x23e   :  { %p756_p13 = scmp.ne.s32.totalorder %s585_s2, 0 }
 0x240   :  { %589 = shalt.err (%p756_p13)  }
 0x241   :  { %591 = vsyncmov [#allocation3 + $0x6] }
 0x244   :  { %s592_s3 = vpop.sfrf %591 }
 0x245   :  { %p757_p0 = scmp.ne.s32.totalorder %s592_s3, 0 }
 0x247   :  { %596 = shalt.err (%p757_p0)  }
 0x248   :  { %598 = vsyncmov [#allocation3 + $0x7] }
 0x24b   :  { %s599_s4 = vpop.sfrf %598 }
 0x24c   :  { %p758_p1 = scmp.ne.s32.totalorder %s599_s4, 0 }
 0x24e   :  { %603 = shalt.err (%p758_p1)  }
 0x24f   :  { %605 = vsyncmov [#allocation3 + $0x8] }
 0x252   :  { %s606_s5 = vpop.sfrf %605 }
 0x253   :  { %p759_p2 = scmp.ne.s32.totalorder %s606_s5, 0 }
 0x255   :  { %610 = shalt.err (%p759_p2)  }
 0x256   :  { %612 = vsyncmov [#allocation3 + $0x9] }
 0x259   :  { %s613_s6 = vpop.sfrf %612 }
 0x25a   :  { %p760_p3 = scmp.ne.s32.totalorder %s613_s6, 0 }
 0x25c   :  { %617 = shalt.err (%p760_p3)  }
 0x25d   :  { %619 = vsyncmov [#allocation3 + $0xa] }
 0x260   :  { %s620_s25 = vpop.sfrf %619 }
 0x261   :  { %p761_p4 = scmp.ne.s32.totalorder %s620_s25, 0 }
 0x263   :  { %624 = shalt.err (%p761_p4)  }
 0x264   :  { %626 = vsyncmov [#allocation3 + $0xb] }
 0x267   :  { %s627_s26 = vpop.sfrf %626 }
 0x268   :  { %p762_p7 = scmp.ne.s32.totalorder %s627_s26, 0 }
 0x26a   :  { %631 = shalt.err (%p762_p7)  }
 0x26b   :  { %633 = vsyncmov [#allocation3 + $0xc] }
 0x26e   :  { %s634_s27 = vpop.sfrf %633 }
 0x26f   :  { %p763_p8 = scmp.ne.s32.totalorder %s634_s27, 0 }
 0x271   :  { %638 = shalt.err (%p763_p8)  }
 0x272   :  { %640 = vsyncmov [#allocation3 + $0xd] }
 0x275   :  { %s641_s19 = vpop.sfrf %640 }
 0x276   :  { %p764_p9 = scmp.ne.s32.totalorder %s641_s19, 0 }
 0x278   :  { %645 = shalt.err (%p764_p9)  }
 0x279   :  { %647 = vsyncmov [#allocation3 + $0xe] }
 0x27c   :  { %s648_s21 = vpop.sfrf %647 }
 0x27d   :  { %p765_p5 = scmp.ne.s32.totalorder %s648_s21, 0 }
 0x27f   :  { %652 = shalt.err (%p765_p5)  }
 0x280   :  { %654 = vsyncmov [#allocation3 + $0xf] }
 0x283   :  { %s655_s7 = vpop.sfrf %654 }
 0x284   :  { %p766_p6 = scmp.ne.s32.totalorder %s655_s7, 0 }
 0x286   :  { %659 = shalt.err (%p766_p6)  }

</bundles_post_ra>
